<compile_context>
chip_gen: v5e
topology: v5e:2x2
jax: 0.10.0
libtpu: 0.0.40
codegen_flags: <defaults>
</compile_context>

<pallas_src>
import functools

import jax
import jax.numpy as jnp
from jax import lax
from jax.experimental import pallas as pl
from jax.experimental.pallas import tpu as pltpu

_LANES = 128


def _mix_partials_kernel(pred_ref, target_ref, out_ref, *, r_total, r_tile, kr):
    """Accumulate per-sample, per-lane partial sums.

    Block shapes:
      pred_ref / target_ref : (1, r_tile, 128)   one sample, a tile of rows
      out_ref               : (1, 4, 128)        resident across the k axis
        row 0: sum(pred * target)   row 1: sum(pred)
        row 2: sum(target)          row 3: sum(elementwise BCE)
    """
    k = pl.program_id(1)

    @pl.when(k == 0)
    def _():
        out_ref[...] = jnp.zeros_like(out_ref)

    p = pred_ref[0].astype(jnp.float32)     # (r_tile, 128)
    t = target_ref[0].astype(jnp.float32)   # (r_tile, 128)

    def accumulate(p, t):
        # Dice partials (per-lane; cross-lane reduce deferred to the wrapper).
        out_ref[0, 0:1, :] += jnp.sum(p * t, axis=0, keepdims=True)
        out_ref[0, 1:2, :] += jnp.sum(p, axis=0, keepdims=True)
        out_ref[0, 2:3, :] += jnp.sum(t, axis=0, keepdims=True)
        # BCE partials. PyTorch clamps the log terms at -100; factored form
        # -(log(1-p) + t*(log p - log(1-p))) saves a mul/add per element.
        log_p = jnp.maximum(jnp.log(p), -100.0)
        log_1mp = jnp.maximum(jnp.log(1.0 - p), -100.0)
        bce = -(log_1mp + t * (log_p - log_1mp))
        out_ref[0, 3:4, :] += jnp.sum(bce, axis=0, keepdims=True)

    ragged = (r_total % r_tile) != 0
    if not ragged:
        # Every tile is full: no masking anywhere.
        accumulate(p, t)
    else:
        # Interior tiles: unmasked fast path.
        @pl.when(k < kr - 1)
        def _():
            accumulate(p, t)

        # Edge tile: rows >= r_total hold arbitrary VMEM contents. Zero both
        # operands *before* the logs (a pred=0/target=0 pair contributes
        # exactly 0 to every partial sum given the clamped logs).
        @pl.when(k == kr - 1)
        def _():
            row = k * r_tile + lax.broadcasted_iota(
                jnp.int32, (r_tile, _LANES), 0)
            valid = row < r_total
            accumulate(jnp.where(valid, p, 0.0), jnp.where(valid, t, 0.0))


def mix_loss(pred, target, alpha=1.0, beta=1.0):
    """pred, target: matching shapes with leading batch dim N (e.g. NCHW)."""
    assert pred.shape == target.shape
    n = pred.shape[0]
    d = 1
    for s in pred.shape[1:]:
        d *= s

    pred_flat = pred.reshape(n, d)
    target_flat = target.reshape(n, d)

    # Lane-align D. When D % 128 == 0 (the common case, and the test case)
    # this is a free metadata reshape — no pad, no extra HBM traffic.
    # Otherwise pad the <128-column remainder with zeros: a (0, 0) pair
    # contributes exactly 0 to all four partials, so no column mask is needed.
    # TODO(synk): avoid the host-side pad copy for lane-unaligned D.
    if d % _LANES != 0:
        d_pad = pl.cdiv(d, _LANES) * _LANES
        pad = ((0, 0), (0, d_pad - d))
        pred_flat = jnp.pad(pred_flat, pad)
        target_flat = jnp.pad(target_flat, pad)
    else:
        d_pad = d

    r = d_pad // _LANES
    pred3 = pred_flat.reshape(n, r, _LANES)
    target3 = target_flat.reshape(n, r, _LANES)

    # Row-tile: big streaming blocks (~2 MiB f32 per input block max).
    # 2 inputs x 2 pipeline buffers x 2 MiB = 8 MiB, comfortably inside the
    # 32 MiB VMEM limit requested below (safe on v5e/v6e/v7x).
    r_tile_cap = 4096
    r_tile = r if r <= r_tile_cap else r_tile_cap
    kr = pl.cdiv(r, r_tile)

    kernel = functools.partial(
        _mix_partials_kernel, r_total=r, r_tile=r_tile, kr=kr)

    partials = pl.pallas_call(
        kernel,
        out_shape=jax.ShapeDtypeStruct((n, 4, _LANES), jnp.float32),
        grid_spec=pltpu.PrefetchScalarGridSpec(
            num_scalar_prefetch=0,
            grid=(n, kr),
            in_specs=[
                pl.BlockSpec((1, r_tile, _LANES), lambda i, k: (i, k, 0)),
                pl.BlockSpec((1, r_tile, _LANES), lambda i, k: (i, k, 0)),
            ],
            out_specs=pl.BlockSpec((1, 4, _LANES), lambda i, k: (i, 0, 0)),
        ),
        compiler_params=pltpu.CompilerParams(
            dimension_semantics=("parallel", "arbitrary"),
            vmem_limit_bytes=32 * 1024 * 1024,
        ),
    )(pred3, target3)

    # Tiny finalize in plain JAX (alpha/beta stay traced: no recompiles).
    sums = jnp.sum(partials, axis=2)                       # (n, 4)
    inter, p_sum, t_sum, bce_sum = (sums[:, 0], sums[:, 1],
                                    sums[:, 2], sums[:, 3])
    smooth = 1.0
    dice = 2.0 * (inter + smooth) / (p_sum + t_sum + smooth)
    dice_loss = 1.0 - jnp.sum(dice) / n
    bce_loss = jnp.sum(bce_sum) / (n * d)
    return alpha * bce_loss + beta * dice_loss


def mix_loss_ref(pred, target, alpha=1.0, beta=1.0):
    n = pred.shape[0]
    smooth = 1.0
    p = pred.reshape(n, -1).astype(jnp.float32)
    t = target.reshape(n, -1).astype(jnp.float32)
    inter = jnp.sum(p * t, axis=1)
    dice = 2.0 * (inter + smooth) / (jnp.sum(p, 1) + jnp.sum(t, 1) + smooth)
    dice_loss = 1.0 - jnp.sum(dice) / n
    log_p = jnp.maximum(jnp.log(p), -100.0)
    log_1mp = jnp.maximum(jnp.log(1.0 - p), -100.0)
    bce = jnp.mean(-(t * log_p + (1.0 - t) * log_1mp))
    return alpha * bce + beta * dice_loss


if __name__ == "__main__":
    key = jax.random.PRNGKey(0)
    k1, k2 = jax.random.split(key)

    # Small NCHW shapes: batch=2, channels=4, spatial=16x16.
    shape = (2, 4, 16, 16)
    pred = jax.nn.sigmoid(jax.random.normal(k1, shape, dtype=jnp.float32))
    target = (jax.random.uniform(k2, shape, dtype=jnp.float32) > 0.5).astype(
        jnp.float32)

    loss = jax.block_until_ready(mix_loss(pred, target, alpha=1.0, beta=1.0))
    ref = jax.block_until_ready(mix_loss_ref(pred, target, alpha=1.0, beta=1.0))

    assert jnp.allclose(loss, ref, rtol=1e-5, atol=1e-5), (loss, ref)
    print("KERNEL_OK")
</pallas_src>

<mosaic_0001>
module attributes {stable_mosaic.version = 11 : i64} {
  func.func @_mix_partials_kernel(%arg0: i32, %arg1: i32, %arg2: memref<1x8x128xf32, #tpu.memory_space<vmem>>, %arg3: memref<1x8x128xf32, #tpu.memory_space<vmem>>, %arg4: memref<1x4x128xf32, #tpu.memory_space<vmem>>) attributes {dimension_semantics = [#tpu.dimension_semantics<parallel>, #tpu.dimension_semantics<arbitrary>], iteration_bounds = array<i64: 2, 1>, scalar_prefetch = 0 : i64, scratch_operands = 0 : i64, tpu.core_type = #tpu.core_type<tc>, window_params = [{transform_indices = @transform_0, window_bounds = array<i64: 1, 8, 128>}, {transform_indices = @transform_1, window_bounds = array<i64: 1, 8, 128>}, {transform_indices = @transform_2, window_bounds = array<i64: 1, 4, 128>}]} {
    %c0_i32 = arith.constant 0 : i32
    %0 = arith.cmpi eq, %arg1, %c0_i32 : i32
    %1 = arith.extui %0 : i1 to i32
    %c0_i32_0 = arith.constant 0 : i32
    %2 = arith.cmpi ne, %1, %c0_i32_0 : i32
    scf.if %2 {
      %cst_34 = arith.constant 0.000000e+00 : f32
      %53 = vector.broadcast %cst_34 : f32 to vector<1x4x128xf32>
      %c0_35 = arith.constant 0 : index
      %c0_36 = arith.constant 0 : index
      %c0_37 = arith.constant 0 : index
      %54 = vector.load %arg4[%c0_35, %c0_36, %c0_37] : memref<1x4x128xf32, #tpu.memory_space<vmem>>, vector<1x4x128xf32>
      tpu.vector_store %arg4[%c0_35, %c0_36, %c0_37], %53 {strides = array<i32>} : memref<1x4x128xf32, #tpu.memory_space<vmem>>, vector<1x4x128xf32>,
    } else {
    }
    %c0 = arith.constant 0 : index
    %c0_1 = arith.constant 0 : index
    %c0_2 = arith.constant 0 : index
    %3 = vector.load %arg2[%c0, %c0_1, %c0_2] : memref<1x8x128xf32, #tpu.memory_space<vmem>>, vector<1x8x128xf32>
    %4 = vector.shape_cast %3 : vector<1x8x128xf32> to vector<8x128xf32>
    %c0_3 = arith.constant 0 : index
    %c0_4 = arith.constant 0 : index
    %c0_5 = arith.constant 0 : index
    %5 = vector.load %arg3[%c0_3, %c0_4, %c0_5] : memref<1x8x128xf32, #tpu.memory_space<vmem>>, vector<1x8x128xf32>
    %6 = vector.shape_cast %5 : vector<1x8x128xf32> to vector<8x128xf32>
    %c0_6 = arith.constant 0 : index
    %c0_7 = arith.constant 0 : index
    %c0_8 = arith.constant 0 : index
    %7 = vector.load %arg4[%c0_6, %c0_7, %c0_8] : memref<1x4x128xf32, #tpu.memory_space<vmem>>, vector<1x1x128xf32>
    %8 = vector.shape_cast %7 : vector<1x1x128xf32> to vector<1x128xf32>
    %9 = arith.mulf %4, %6 : vector<8x128xf32>
    %cst = arith.constant dense<0.000000e+00> : vector<128xf32>
    %10 = vector.multi_reduction <add>, %9, %cst [0] : vector<8x128xf32> to vector<128xf32>
    %11 = vector.shape_cast %10 : vector<128xf32> to vector<1x128xf32>
    %12 = arith.addf %8, %11 : vector<1x128xf32>
    %c0_9 = arith.constant 0 : index
    %c0_10 = arith.constant 0 : index
    %c0_11 = arith.constant 0 : index
    %13 = vector.load %arg4[%c0_9, %c0_10, %c0_11] : memref<1x4x128xf32, #tpu.memory_space<vmem>>, vector<1x1x128xf32>
    %14 = vector.shape_cast %13 : vector<1x1x128xf32> to vector<1x128xf32>
    %15 = vector.shape_cast %12 : vector<1x128xf32> to vector<1x1x128xf32>
    tpu.vector_store %arg4[%c0_9, %c0_10, %c0_11], %15 {strides = array<i32>} : memref<1x4x128xf32, #tpu.memory_space<vmem>>, vector<1x1x128xf32>,
    %c0_12 = arith.constant 0 : index
    %c1 = arith.constant 1 : index
    %c0_13 = arith.constant 0 : index
    %16 = vector.load %arg4[%c0_12, %c1, %c0_13] : memref<1x4x128xf32, #tpu.memory_space<vmem>>, vector<1x1x128xf32>
    %17 = vector.shape_cast %16 : vector<1x1x128xf32> to vector<1x128xf32>
    %cst_14 = arith.constant dense<0.000000e+00> : vector<128xf32>
    %18 = vector.multi_reduction <add>, %4, %cst_14 [0] : vector<8x128xf32> to vector<128xf32>
    %19 = vector.shape_cast %18 : vector<128xf32> to vector<1x128xf32>
    %20 = arith.addf %17, %19 : vector<1x128xf32>
    %c0_15 = arith.constant 0 : index
    %c1_16 = arith.constant 1 : index
    %c0_17 = arith.constant 0 : index
    %21 = vector.load %arg4[%c0_15, %c1_16, %c0_17] : memref<1x4x128xf32, #tpu.memory_space<vmem>>, vector<1x1x128xf32>
    %22 = vector.shape_cast %21 : vector<1x1x128xf32> to vector<1x128xf32>
    %23 = vector.shape_cast %20 : vector<1x128xf32> to vector<1x1x128xf32>
    tpu.vector_store %arg4[%c0_15, %c1_16, %c0_17], %23 {strides = array<i32>} : memref<1x4x128xf32, #tpu.memory_space<vmem>>, vector<1x1x128xf32>,
    %c0_18 = arith.constant 0 : index
    %c2 = arith.constant 2 : index
    %c0_19 = arith.constant 0 : index
    %24 = vector.load %arg4[%c0_18, %c2, %c0_19] : memref<1x4x128xf32, #tpu.memory_space<vmem>>, vector<1x1x128xf32>
    %25 = vector.shape_cast %24 : vector<1x1x128xf32> to vector<1x128xf32>
    %cst_20 = arith.constant dense<0.000000e+00> : vector<128xf32>
    %26 = vector.multi_reduction <add>, %6, %cst_20 [0] : vector<8x128xf32> to vector<128xf32>
    %27 = vector.shape_cast %26 : vector<128xf32> to vector<1x128xf32>
    %28 = arith.addf %25, %27 : vector<1x128xf32>
    %c0_21 = arith.constant 0 : index
    %c2_22 = arith.constant 2 : index
    %c0_23 = arith.constant 0 : index
    %29 = vector.load %arg4[%c0_21, %c2_22, %c0_23] : memref<1x4x128xf32, #tpu.memory_space<vmem>>, vector<1x1x128xf32>
    %30 = vector.shape_cast %29 : vector<1x1x128xf32> to vector<1x128xf32>
    %31 = vector.shape_cast %28 : vector<1x128xf32> to vector<1x1x128xf32>
    tpu.vector_store %arg4[%c0_21, %c2_22, %c0_23], %31 {strides = array<i32>} : memref<1x4x128xf32, #tpu.memory_space<vmem>>, vector<1x1x128xf32>,
    %32 = math.log %4 : vector<8x128xf32>
    %cst_24 = arith.constant -1.000000e+02 : f32
    %33 = vector.broadcast %cst_24 : f32 to vector<8x128xf32>
    %34 = arith.maximumf %32, %33 : vector<8x128xf32>
    %cst_25 = arith.constant 1.000000e+00 : f32
    %35 = vector.broadcast %cst_25 : f32 to vector<8x128xf32>
    %36 = arith.subf %35, %4 : vector<8x128xf32>
    %37 = math.log %36 : vector<8x128xf32>
    %cst_26 = arith.constant -1.000000e+02 : f32
    %38 = vector.broadcast %cst_26 : f32 to vector<8x128xf32>
    %39 = arith.maximumf %37, %38 : vector<8x128xf32>
    %40 = arith.subf %34, %39 : vector<8x128xf32>
    %41 = arith.mulf %6, %40 : vector<8x128xf32>
    %42 = arith.addf %39, %41 : vector<8x128xf32>
    %cst_27 = arith.constant 0.000000e+00 : f32
    %43 = vector.broadcast %cst_27 : f32 to vector<8x128xf32>
    %44 = arith.subf %43, %42 : vector<8x128xf32>
    %c0_28 = arith.constant 0 : index
    %c3 = arith.constant 3 : index
    %c0_29 = arith.constant 0 : index
    %45 = vector.load %arg4[%c0_28, %c3, %c0_29] : memref<1x4x128xf32, #tpu.memory_space<vmem>>, vector<1x1x128xf32>
    %46 = vector.shape_cast %45 : vector<1x1x128xf32> to vector<1x128xf32>
    %cst_30 = arith.constant dense<0.000000e+00> : vector<128xf32>
    %47 = vector.multi_reduction <add>, %44, %cst_30 [0] : vector<8x128xf32> to vector<128xf32>
    %48 = vector.shape_cast %47 : vector<128xf32> to vector<1x128xf32>
    %49 = arith.addf %46, %48 : vector<1x128xf32>
    %c0_31 = arith.constant 0 : index
    %c3_32 = arith.constant 3 : index
    %c0_33 = arith.constant 0 : index
    %50 = vector.load %arg4[%c0_31, %c3_32, %c0_33] : memref<1x4x128xf32, #tpu.memory_space<vmem>>, vector<1x1x128xf32>
    %51 = vector.shape_cast %50 : vector<1x1x128xf32> to vector<1x128xf32>
    %52 = vector.shape_cast %49 : vector<1x128xf32> to vector<1x1x128xf32>
    tpu.vector_store %arg4[%c0_31, %c3_32, %c0_33], %52 {strides = array<i32>} : memref<1x4x128xf32, #tpu.memory_space<vmem>>, vector<1x1x128xf32>,
    return
  }
  func.func @transform_0(%arg0: i32, %arg1: i32) -> (i32, i32, i32) {
    %c0_i32 = arith.constant 0 : i32
    %c0_i32_0 = arith.constant 0 : i32
    return %arg0, %arg1, %c0_i32 : i32, i32, i32
  }
  func.func @transform_1(%arg0: i32, %arg1: i32) -> (i32, i32, i32) {
    %c0_i32 = arith.constant 0 : i32
    %c0_i32_0 = arith.constant 0 : i32
    return %arg0, %arg1, %c0_i32 : i32, i32, i32
  }
  func.func @transform_2(%arg0: i32, %arg1: i32) -> (i32, i32, i32) {
    %c0_i32 = arith.constant 0 : i32
    %c0_i32_0 = arith.constant 0 : i32
    %c0_i32_1 = arith.constant 0 : i32
    return %arg0, %c0_i32, %c0_i32_0 : i32, i32, i32
  }
}

</mosaic_0001>

<bundles_post_ra>
// kernel: tpu_custom_call.1
= control target key start
LH: loop header
LB: loop body
LE: loop exit
PB: predicated region body
PF: predicated region fallthrough
CT: control target
= control target key end

     0   :  { %7 = vsyncpa [#allocation3], 0  ;;  %s785_s0 = inlined_call_operand.hbm [shape: f32[2,8,128], index: 0, kind: input, shape index: {}]   ;;  %s786_s1 = inlined_call_operand.hbm [shape: f32[2,8,128], index: 1, kind: input, shape index: {}]   ;;  %s787_s2 = inlined_call_operand.hbm [shape: f32[2,4,128], index: 2, kind: output, shape index: {}]  }
   0x1   :  { %9 = vsyncpa [#allocation3 + $0x1], 0 }
   0x2   :  { %10 = vsyncpa [#allocation6], 0 }
   0x3   :  { %12 = vsyncpa [#allocation6 + $0x1], 0 }
   0x4   :  { %13 = vsyncpa [#allocation4], 0 }
   0x5   :  { %15 = vsyncpa [#allocation4 + $0x1], 0  ;;  %s644_s9 = smov 0   ;;  %s646_s10 = smov 0  }
   0x6   :  { %s648_s11 = smov 0   ;;  %s650_s12 = smov 0  }
   0x7   :  { %s652_s13 = smov 0   ;;  %s654_s14 = smov 0  }
   0x8 LB: > { %s392_s15 = sadd.s32 4294967295, %s626_s14   ;;  %s393_s16 = sadd.s32 4294967294, %s626_s14   ;;  %s626_s14 = sphi %s654_s14, %s21_s14   ;;  %s622_s13 = sphi %s652_s13, %s796_s13   ;;  %s618_s12 = sphi %s650_s12, %s795_s12   ;;  %s614_s11 = sphi %s648_s11, %s794_s11   ;;  %s610_s10 = sphi %s646_s10, %s793_s10   ;;  %s606_s9 = sphi %s644_s9, %s792_s9  }
   0x9   : > { %s33_s17 = sadd.s32 1, %s622_s13  ;;  %s42_s18 = sadd.s32 1, %s614_s11 }
   0xa   : > { %p35_p0 = scmp.ge.s32.totalorder %s33_s17, 2  ;;  %p49_p1 = scmp.ne.s32.totalorder %s614_s11, %s610_s10 }
   0xb   : > { %p50_p2 = scmp.eq.s32.totalorder %s626_s14, 0  ;;  %p55_p3 = scmp.ne.s32.totalorder %s610_s10, %s606_s9 }
   0xc   : > { %s798_s17 = smov (%p35_p0, %s33_s17), 0  ;;  %p56_p5 = scmp.eq.s32.totalorder %s392_s15, 0 }
   0xd   : > { %p685_p4 = por %p50_p2, %p49_p1  ;;  %s37_s20 = ssub.s32 %s622_s13, %s798_s17 }
   0xe   : > { %p107_p6 = scmp.eq.s32.totalorder %s392_s15, 1  ;;  %p40_p7 = scmp.eq.s32.totalorder %s37_s20, 0 }
   0xf   : > { %p691_p8 = por %p56_p5, %p55_p3  ;;  %p113_p10 = scmp.eq.s32.totalorder %s393_s16, 1 }
  0x10   : > { %p695_p9 = por %p107_p6, %p49_p1  ;;  %p395_p12 = scmp.ge.s32.totalorder %s626_s14, 2 }
  0x11   : > { %s700_s23 = scalar_select %p40_p7, %s614_s11, %s42_s18  }
  0x12   : > { %p702_p11 = por %p113_p10, %p55_p3  ;;  %p425_p13 = scmp.lt.s32.totalorder %s626_s14, 2 }
  0x13   : > { %s133_s25 = sand.u32 1, %s614_s11   ;;  %s397_s27 = sshll.u32 %s622_s13, 3 }
  0x14   : > { %s396_s26 = sshll.u32 %s133_s25, 3  ;;  %s142_s30 = scalar_lea.hbm %s785_s0, %s397_s27 }
  0x15   : > { %s137_s3 = scalar_lea.vmem [#allocation2], %s396_s26  ;;  %s144_s5 = sshll.u32 %s142_s30, 4  ;;  %s145_s5 = int_to_ptr.hbm [resolvable:$true] %s144_s5 }
  0x16   : > { %s146_s4 = sshll.u32 %s137_s3, 4  ;;  %p415_p0 = pnand %p425_p13, %p685_p4  ;;  %s147_s4 = int_to_ptr.vmem [resolvable:$true] %s146_s4 }
  0x17   : > { %p400_p1 = scmp.ge.s32.totalorder %s626_s14, 1  ;;  %p171_p2 = scmp.lt.s32.totalorder %s626_s14, 3 }
  0x18   : > { %s134_s6 = scalar_lea.sflag [#allocation3], %s133_s25  ;;  %s162_s15 = scalar_lea.hbm %s786_s1, %s397_s27 }
  0x19   : > { %417 = dma.hbm_to_vmem [thread:$0]  (!%p415_p0), %s145_s5, 128, %s147_s4, %s134_s6  }
  0x1a   : > { %p172_p3 = pnand %p400_p1, %p171_p2  ;;  %s157_s16 = scalar_lea.vmem [#allocation5], %s396_s26 }
  0x1b   : > { %s166_s18 = sshll.u32 %s157_s16, 4  ;;  %s164_s20 = sshll.u32 %s162_s15, 4  ;;  %s167_s18 = int_to_ptr.vmem [resolvable:$true] %s166_s18  ;;  %s165_s20 = int_to_ptr.hbm [resolvable:$true] %s164_s20 }
  0x1c   : > { %s154_s28 = scalar_lea.sflag [#allocation6], %s133_s25  ;;  %175 = sbr.rel (%p172_p3) target bundleno = 76 (0x4c), region = 28 }
  0x1d   : > { %420 = dma.hbm_to_vmem [thread:$0]  (!%p415_p0), %s165_s20, 128, %s167_s18, %s154_s28  }
  0x1e   : > { %s721_s19 = sand.u32 (!%p172_p3), 1, %s610_s10  }
  0x1f   : > { %s401_s29 = sshll.u32 (!%p172_p3), %s721_s19, 3  ;;  %s178_s30 = scalar_lea.sflag (!%p172_p3), [#allocation3], %s721_s19 }
  0x20   : > { %s181_s3 = scalar_lea.vmem (!%p172_p3), [#allocation2], %s401_s29 }
  0x21   : > { %593 = dma.done.wait (%p691_p8), %s178_s30, 128  }
  0x22   : > { %595 = vsyncadd (%p691_p8), %s178_s30, 4294967168  ;;  %s188_s26 = scalar_lea.sflag [#allocation6], %s721_s19  ;;  %s191_s25 = scalar_lea.vmem [#allocation5], %s401_s29 }
  0x23   : > { %597 = dma.done.wait (%p691_p8), %s188_s26, 128  }
  0x24   : > { %599 = vsyncadd (%p691_p8), %s188_s26, 4294967168  ;;  %s403_s27 = sshll.u32 %s721_s19, 2  ;;  %v628_v0 = vmov 0.0   ;;  %v223_v1 = vld [vmem:[%s181_s3] sm:$0xff]  ;;  %v224_v2 = vld [vmem:[%s191_s25] sm:$0xff]  ;;  %s405_s21 = sshll.u32 %s618_s12, 2 }
  0x25   : > { %s735_s4 = scalar_lea.vmem [#allocation7], %s403_s27  ;;  %v226_v3 = vmul.f32 %v224_v2, %v223_v1  ;;  %v236_v4 = vrot.slane %v223_v1, 4  ;;  %v245_v5 = vrot.slane %v224_v2, 4  ;;  %476 = vlog2.f32 %v223_v1  ;;  %s284_s7 = scalar_lea.hbm %s787_s2, %s405_s21 }
  0x26   : > { %222 = vst [vmem:[%s735_s4] sm:$0xf] %v628_v0  ;;  %v256_v9 = vsub.f32 1.0, %v223_v1  ;;  %s286_s8 = sshll.u32 %s735_s4, 4  ;;  %s288_s15 = sshll.u32 %s284_s7, 4  ;;  %s287_s8 = int_to_ptr.vmem [resolvable:$true] %s286_s8  ;;  %s289_s15 = int_to_ptr.hbm [resolvable:$true] %s288_s15 }
  0x27   : > { %v227_v6 = vrot.slane %v226_v3, 4  ;;  %v237_v7 = vadd.f32 %v236_v4, %v223_v1  ;;  %v246_v8 = vadd.f32 %v245_v5, %v224_v2  ;;  %s274_s16 = scalar_lea.sflag [#allocation4], %s721_s19  ;;  %s554_s18 = sshra.s32 %s289_s15, 4  ;;  %s555_s18 = int_to_ptr.hbm [resolvable:$true] %s554_s18 }
  0x28   : > { %478 = vlog2.f32 %v256_v9  ;;  %s556_s12 = scalar_lea.hbm %s555_s18, 4  ;;  %s560_s29 = scalar_lea.hbm %s787_s2, 8 }
  0x29   : > { %v228_v10 = vadd.f32 %v227_v6, %v226_v3  ;;  %v238_v11 = vrot.slane %v237_v7, 2  ;;  %v247_v12 = vrot.slane %v246_v8, 2  ;;  %p557_p4 = scmp.ne.s32.totalorder %s555_s18, %s556_s12  ;;  %p561_p7 = scmp.lt.s32.totalorder %s555_s18, %s787_s2 }
  0x2a   : > { %p562_p8 = scmp.lt.s32.totalorder %s560_s29, %s556_s12 }
  0x2b   : > { %v477_v13 = vpop.eup %476  ;;  %v229_v14 = vrot.slane %v228_v10, 2  ;;  %v239_v15 = vadd.f32 %v238_v11, %v237_v7  ;;  %v248_v16 = vadd.f32 %v247_v12, %v246_v8  ;;  %p558_p5 = pnand %p557_p4, %p695_p9 }
  0x2c   : > { %v254_v17 = vmul.f32 0.6931472, %v477_v13  ;;  %p563_p10 = por %p562_p8, %p561_p7 }
  0x2d   : > { %v230_v18 = vadd.f32 %v229_v14, %v228_v10  ;;  %v240_v19 = vrot.slane %v239_v15, 1  ;;  %v249_v20 = vrot.slane %v248_v16, 1  ;;  %v235_v21 = vld [vmem:[%s735_s4 + $0x1] sm:$0x1]  ;;  %v244_v22 = vld [vmem:[%s735_s4 + $0x2] sm:$0x1]  ;;  %p559_p6 = pneg %p558_p5 }
  0x2e   : > { %v479_v23 = vpop.eup %478  ;;  %v225_v27 = vld [vmem:[%s735_s4] sm:$0x1]  ;;  %v255_v28 = vmax.f32 %v254_v17, -100.0  ;;  %v264_v44 = vld [vmem:[%s735_s4 + $0x3] sm:$0x1] }
  0x2f   : > { %v231_v24 = vrot.slane %v230_v18, 1  ;;  %v241_v25 = vadd.f32 %v240_v19, %v239_v15  ;;  %v250_v26 = vadd.f32 %v249_v20, %v248_v16  ;;  %v258_v29 = vmul.f32 0.6931472, %v479_v23  ;;  %p564_p13 = pnand %p563_p10, %p559_p6 }
  0x31   : > { %v232_v30 = vadd.f32 %v231_v24, %v230_v18  ;;  %v242_v31 = vadd.f32 %v241_v25, %v235_v21  ;;  %v251_v32 = vadd.f32 %v250_v26, %v244_v22  ;;  %v259_v33 = vmax.f32 %v258_v29, -100.0 }
  0x33   : > { %v233_v34 = vadd.f32 %v232_v30, %v225_v27  ;;  %243 = vst [vmem:[%s735_s4 + $0x1] sm:$0x1] %v242_v31  ;;  %v260_v35 = vsub.f32 %v255_v28, %v259_v33 }
  0x34   : > { %252 = vst [vmem:[%s735_s4 + $0x2] sm:$0x1] %v251_v32 }
  0x35   : > { %234 = vst [vmem:[%s735_s4] sm:$0x1] %v233_v34  ;;  %v261_v36 = vmul.f32 %v260_v35, %v224_v2 }
  0x37   : > { %v262_v37 = vadd.f32 %v261_v36, %v259_v33 }
  0x39   : > { %v263_v38 = vsub.f32 0.0, %v262_v37 }
  0x3b   : > { %v265_v39 = vrot.slane %v263_v38, 4 }
  0x3d   : > { %v266_v40 = vadd.f32 %v265_v39, %v263_v38 }
  0x3f   : > { %v267_v41 = vrot.slane %v266_v40, 2 }
  0x41   : > { %v268_v42 = vadd.f32 %v267_v41, %v266_v40 }
  0x43   : > { %v269_v43 = vrot.slane %v268_v42, 1 }
  0x45   : > { %v270_v45 = vadd.f32 %v269_v43, %v268_v42 }
  0x47   : > { %v271_v46 = vadd.f32 %v270_v45, %v264_v44 }
  0x49   : > { %272 = vst [vmem:[%s735_s4 + $0x3] sm:$0x1] %v271_v46 }
  0x4a   : > { %567 = shalt.err (!%p564_p13)
}
  0x4b   : > { %412 = dma.vmem_to_hbm [thread:$0]  (%p695_p9), %s287_s8, 64, %s289_s15, %s274_s16  }
  0x4c PF: > { %s300_s19 = sand.u32 1, %s606_s9   ;;  %p422_p0 = pnand %p395_p12, %p702_p11 }
  0x4d   : > { %s301_s26 = scalar_lea.sflag [#allocation4], %s300_s19 }
  0x4e   : > { %p423_p1 = pneg %p422_p0 }
  0x50   : > { %601 = dma.done.wait (%p423_p1), %s301_s26, 64  }
  0x51   : > { %603 = vsyncadd (%p423_p1), %s301_s26, 4294967232  ;;  %s21_s14 = sadd.s32 1, %s626_s14   ;;  %s792_s9 = smov %s610_s10 }
  0x52   : > { %p18_p2 = scmp.ge.s32.totalorder %s21_s14, 4   ;;  %s793_s10 = smov %s614_s11 }
  0x53   : > { %s794_s11 = smov %s700_s23  ;;  %s795_s12 = smov %s622_s13 }
  0x54   : > { %s796_s13 = smov %s798_s17  ;;  %20 = sbr.rel (!%p18_p2) target bundleno = 8 (0x8), region = 90 }
  0x59   :  { %307 = vsyncpa [#allocation3], 1 }
  0x5a   :  { %309 = vsyncpa [#allocation3 + $0x1], 1 }
  0x5b   :  { %310 = vsyncpa [#allocation6], 1 }
  0x5c   :  { %312 = vsyncpa [#allocation6 + $0x1], 1 }
  0x5d   :  { %313 = vsyncpa [#allocation4], 1 }
  0x5e   :  { %315 = vsyncpa [#allocation4 + $0x1], 1 }

</bundles_post_ra>
